<compile_context>
chip_gen: v5e
topology: v5e:2x2
jax: 0.10.0
libtpu: 0.0.40
codegen_flags: <defaults>
</compile_context>

<pallas_src>
import jax
import jax.numpy as jnp
from jax.experimental import pallas as pl
from jax.experimental.pallas import tpu as pltpu

_LEAKY_SLOPE = 0.2
_MIB = 1024 * 1024


def _apply_activation(x, activation):
    if activation == 'relu':
        return jnp.maximum(x, 0.0)
    elif activation == 'leakyrelu':
        return jnp.where(x >= 0, x, _LEAKY_SLOPE * x)
    elif activation == 'sigmoid':
        return jax.nn.sigmoid(x)
    elif activation == 'tanh':
        return jnp.tanh(x)
    else:
        raise Exception('{} activation not recognized.'.format(activation))


def _make_ffn_kernel(layer_cfgs, activation, eps):
    """layer_cfgs: tuple of (use_layernorm: bool, skip_connection: bool)."""

    def kernel(*refs):
        x_ref = refs[0]
        o_ref = refs[-1]
        p_refs = refs[1:-1]

        h = x_ref[...].astype(jnp.float32)                       # (tm, in_p)
        idx = 0
        for (use_ln, skip) in layer_cfgs:
            w = p_refs[idx][...]; idx += 1                        # (K, N), bf16
            vec = p_refs[idx][...].astype(jnp.float32); idx += 1  # (1|3, N), f32
            # bf16 x bf16 -> f32 accumulate: native MXU rate on v5e/v6e/v7x.
            y = jnp.dot(h.astype(w.dtype), w, preferred_element_type=jnp.float32)
            y = y + vec[0:1, :]
            y = _apply_activation(y, activation)
            # TODO(synk): nn.Dropout is identity in eval/inference mode; training-mode
            # stochastic masking is not implemented here.
            if skip:
                y = y + h
            if use_ln:
                g, bt = vec[1:2, :], vec[2:3, :]
                mean = jnp.mean(y, axis=-1, keepdims=True)
                c = y - mean
                var = jnp.mean(c * c, axis=-1, keepdims=True)     # biased, like nn.LayerNorm
                y = (c * jax.lax.rsqrt(var + eps)) * g + bt       # rsqrt -> EUP slot
            h = y
        o_ref[...] = h.astype(o_ref.dtype)

    return kernel


def _vmem_budget_and_limit():
    """(tile budget bytes, vmem_limit_bytes) sized per chip generation."""
    try:
        cap = int(pltpu.get_tpu_info().vmem_capacity_bytes)
    except Exception:
        cap = 64 * _MIB                          # conservative (v7x-class) fallback
    if cap >= 128 * _MIB:                        # v5e / v6e: use most of the 128 MiB
        return 96 * _MIB, 112 * _MIB
    budget = min(36 * _MIB, max(8 * _MIB, cap // 2))   # v7x: leave spill headroom
    limit = min(52 * _MIB, max(budget + 4 * _MIB, cap - 8 * _MIB))
    return budget, limit


def _choose_row_tile(rows, dims, io_itemsize, param_bytes, budget_bytes, sub,
                     max_tile=4096):
    """Largest row tile whose pipelined VMEM footprint fits the budget."""
    max_dim = max(dims)
    per_row = (2 * io_itemsize * dims[0]         # double-buffered input tile
               + 2 * io_itemsize * dims[-1]      # double-buffered output tile
               + 4 * 4 * max_dim                 # live f32 activations (h, y, c, slack)
               + 2 * max_dim)                    # bf16 operand copy fed to the MXU
    avail = max(budget_bytes - param_bytes, per_row * sub)
    tm = min(max_tile, avail // per_row)
    tm = max(sub, (tm // sub) * sub)
    rows_up = max(sub, ((rows + sub - 1) // sub) * sub)
    tm = min(tm, rows_up)
    # Keep >=2 grid steps on the "parallel" row axis so v7x's 2nd TensorCore works.
    if rows_up >= 2 * sub:
        tm = min(tm, max(sub, (rows_up // 2 // sub) * sub))
    return tm


def multilayer_ffn_forward(x, layers, *, activation='relu', eps=1e-5,
                           matmul_dtype=jnp.bfloat16, row_tile=None):
    """Forward pass of MultiLayerFeedForwardNN (inference).

    x: (..., input_dim)
    layers: list of dicts per layer:
        'W': (K, N) weight laid out so y = x @ W + b
        'b': (N,)
        'gamma', 'beta': (N,) or None (None => no LayerNorm on this layer)
        'skip': bool (residual add; silently disabled when K != N, like the module)
    """
    orig_shape = x.shape
    in_dim = int(orig_shape[-1])
    rows = 1
    for s in orig_shape[:-1]:
        rows *= int(s)
    x2 = x.reshape(rows, in_dim)

    # ---- collect per-layer params; mirror the module's skip semantics -------
    Ws, vec_parts, cfgs = [], [], []
    for l in layers:
        W = jnp.asarray(l['W'])
        K, N = int(W.shape[0]), int(W.shape[1])
        use_ln = l.get('gamma') is not None
        skip = bool(l.get('skip', False)) and (K == N)   # module disables skip when dims differ
        Ws.append(W)
        vec_parts.append((
            jnp.asarray(l['b']).reshape(N),
            jnp.asarray(l['gamma']).reshape(N) if use_ln else None,
            jnp.asarray(l['beta']).reshape(N) if use_ln else None,
        ))
        cfgs.append((use_ln, skip))

    out_dim = int(Ws[-1].shape[1])

    # ---- lane-dense I/O: pad feature dims to multiples of 128 where safe ----
    def _ceil(a, m):
        return ((a + m - 1) // m) * m

    in_p = in_dim
    if in_dim % 128 != 0 and not cfgs[0][1]:     # unsafe only if layer 0 uses skip
        in_p = _ceil(in_dim, 128)
        x2 = jnp.pad(x2, ((0, 0), (0, in_p - in_dim)))
        Ws[0] = jnp.pad(Ws[0], ((0, in_p - in_dim), (0, 0)))   # zero rows -> same result

    out_p = out_dim
    last_ln, last_skip = cfgs[-1]
    if out_dim % 128 != 0 and not last_ln and not last_skip:
        out_p = _ceil(out_dim, 128)
        Ws[-1] = jnp.pad(Ws[-1], ((0, 0), (0, out_p - out_dim)))
        b, g, bt = vec_parts[-1]
        vec_parts[-1] = (jnp.pad(b, (0, out_p - out_dim)), g, bt)

    # ---- pack b / gamma / beta into one small block per layer ---------------
    vecs = []
    for (b, g, bt) in vec_parts:
        if g is None:
            vecs.append(b.reshape(1, -1).astype(jnp.float32))
        else:
            vecs.append(jnp.stack([b, g, bt], axis=0).astype(jnp.float32))
    Ws = [w.astype(matmul_dtype) for w in Ws]

    dims = [in_p] + [int(w.shape[1]) for w in Ws]

    # ---- per-generation VMEM budget & row tile -------------------------------
    budget, vmem_limit = _vmem_budget_and_limit()
    io_itemsize = jnp.dtype(x.dtype).itemsize
    sub = max(8, 32 // max(1, io_itemsize))      # sublane multiple for the I/O dtype
    w_itemsize = jnp.dtype(matmul_dtype).itemsize
    # Conservative (double-buffered) parameter footprint; Buffered(1) only adds headroom.
    param_bytes = sum(2 * w_itemsize * int(w.shape[0]) * int(w.shape[1]) for w in Ws)
    param_bytes += sum(2 * 4 * 8 * int(v.shape[1]) for v in vecs)   # (.,N) pads to 8 sublanes

    if row_tile is not None:
        tm = max(sub, (int(row_tile) // sub) * sub)
    else:
        tm = _choose_row_tile(rows, dims, io_itemsize, param_bytes, budget, sub)

    rows_p = pl.cdiv(rows, tm) * tm
    if rows_p != rows:
        x2 = jnp.pad(x2, ((0, rows_p - rows), (0, 0)))
    grid = (rows_p // tm,)

    kernel = _make_ffn_kernel(tuple(cfgs), activation, eps)
    params = [a for pair in zip(Ws, vecs) for a in pair]

    def _run(use_buffered):
        def _pspec(shape):
            if use_buffered:
                # Constant-index blocks are never re-fetched; single-buffer them.
                return pl.BlockSpec(shape, lambda i: (0, 0),
                                    pipeline_mode=pl.Buffered(1))
            return pl.BlockSpec(shape, lambda i: (0, 0))

        in_specs = [pl.BlockSpec((tm, in_p), lambda i: (i, 0))]
        for p in params:
            in_specs.append(_pspec(tuple(int(s) for s in p.shape)))

        out = pl.pallas_call(
            kernel,
            out_shape=jax.ShapeDtypeStruct((rows_p, dims[-1]), x.dtype),
            grid_spec=pltpu.PrefetchScalarGridSpec(
                num_scalar_prefetch=0,
                grid=grid,
                in_specs=in_specs,
                out_specs=pl.BlockSpec((tm, dims[-1]), lambda i: (i, 0)),
            ),
            compiler_params=pltpu.CompilerParams(
                dimension_semantics=("parallel",),
                vmem_limit_bytes=vmem_limit,
            ),
        )(x2, *params)
        return jax.block_until_ready(out)

    try:
        out = _run(True)
    except Exception:
        # Fallback if this JAX build rejects pipeline_mode / Buffered(1).
        out = _run(False)

    out = out[:rows, :out_dim]
    return out.reshape(orig_shape[:-1] + (out_dim,))


if __name__ == "__main__":
    key = jax.random.PRNGKey(0)

    # Shapes consistent with the module: x is [batch, seq, input_dim].
    batch, seq = 2, 8
    input_dim, hidden_dim, output_dim = 32, 128, 64
    num_hidden_layers = 2
    activation = 'relu'            # MultiLayerFeedForwardNN default
    skip_connection = True
    use_layernormalize = True
    eps = 1e-5                     # nn.LayerNorm default

    # Build the layer list exactly like MultiLayerFeedForwardNN.__init__:
    layer_dims = []
    layer_flags = []               # (use_layernorm, skip)
    if num_hidden_layers <= 0:
        layer_dims.append((input_dim, output_dim))
        layer_flags.append((False, False))
    else:
        layer_dims.append((input_dim, hidden_dim))
        layer_flags.append((use_layernormalize,
                            skip_connection and (input_dim == hidden_dim)))
        for _ in range(num_hidden_layers - 1):
            layer_dims.append((hidden_dim, hidden_dim))
            layer_flags.append((use_layernormalize, skip_connection))
        layer_dims.append((hidden_dim, output_dim))
        layer_flags.append((False, False))

    keys = jax.random.split(key, 2 * len(layer_dims) + 1)
    x = jax.random.normal(keys[0], (batch, seq, input_dim), dtype=jnp.float32)

    layers = []
    for li, ((k_in, k_out), (use_ln, skip)) in enumerate(zip(layer_dims, layer_flags)):
        wkey, bkey = keys[1 + 2 * li], keys[2 + 2 * li]
        bound_w = (6.0 / (k_in + k_out)) ** 0.5          # xavier_uniform_
        W = jax.random.uniform(wkey, (k_in, k_out), minval=-bound_w, maxval=bound_w,
                               dtype=jnp.float32)
        bound_b = 1.0 / (k_in ** 0.5)                    # nn.Linear default bias init
        b = jax.random.uniform(bkey, (k_out,), minval=-bound_b, maxval=bound_b,
                               dtype=jnp.float32)
        layers.append({
            'W': W,
            'b': b,
            'gamma': jnp.ones((k_out,), jnp.float32) if use_ln else None,
            'beta': jnp.zeros((k_out,), jnp.float32) if use_ln else None,
            'skip': skip,
        })

    out = multilayer_ffn_forward(x, layers, activation=activation, eps=eps)
    out = jax.block_until_ready(out)

    # Plain-JAX f32 reference (same inference semantics: dropout = identity).
    def ref_forward(xv):
        h = xv
        for l, (use_ln, skip) in zip(layers, layer_flags):
            y = jnp.dot(h, l['W'], preferred_element_type=jnp.float32) + l['b']
            y = _apply_activation(y, activation)
            if skip:
                y = y + h
            if use_ln:
                mean = jnp.mean(y, axis=-1, keepdims=True)
                var = jnp.mean((y - mean) ** 2, axis=-1, keepdims=True)
                y = (y - mean) * jax.lax.rsqrt(var + eps) * l['gamma'] + l['beta']
            h = y
        return h

    ref = ref_forward(x)
    assert out.shape == (batch, seq, output_dim)
    # bf16 MXU operands vs f32 reference -> allow ~1e-2-level error.
    assert jnp.allclose(out, ref, atol=5e-2, rtol=5e-2), "mismatch vs reference"

    print("KERNEL_OK")
</pallas_src>

<mosaic_0001>
module attributes {stable_mosaic.version = 11 : i64} {
  func.func @kernel(%arg0: i32, %arg1: memref<8x128xf32, #tpu.memory_space<vmem>>, %arg2: memref<128x128xbf16, #tpu.memory_space<vmem>>, %arg3: memref<3x128xf32, #tpu.memory_space<vmem>>, %arg4: memref<128x128xbf16, #tpu.memory_space<vmem>>, %arg5: memref<3x128xf32, #tpu.memory_space<vmem>>, %arg6: memref<128x128xbf16, #tpu.memory_space<vmem>>, %arg7: memref<1x128xf32, #tpu.memory_space<vmem>>, %arg8: memref<8x128xf32, #tpu.memory_space<vmem>>) attributes {dimension_semantics = [#tpu.dimension_semantics<parallel>], iteration_bounds = array<i64: 2>, scalar_prefetch = 0 : i64, scratch_operands = 0 : i64, tpu.core_type = #tpu.core_type<tc>, window_params = [{transform_indices = @transform_0, window_bounds = array<i64: 8, 128>}, {pipeline_mode = #tpu.pipeline_mode<synchronous>, transform_indices = @transform_1, window_bounds = array<i64: 128, 128>}, {pipeline_mode = #tpu.pipeline_mode<synchronous>, transform_indices = @transform_2, window_bounds = array<i64: 3, 128>}, {pipeline_mode = #tpu.pipeline_mode<synchronous>, transform_indices = @transform_3, window_bounds = array<i64: 128, 128>}, {pipeline_mode = #tpu.pipeline_mode<synchronous>, transform_indices = @transform_4, window_bounds = array<i64: 3, 128>}, {pipeline_mode = #tpu.pipeline_mode<synchronous>, transform_indices = @transform_5, window_bounds = array<i64: 128, 128>}, {pipeline_mode = #tpu.pipeline_mode<synchronous>, transform_indices = @transform_6, window_bounds = array<i64: 1, 128>}, {transform_indices = @transform_7, window_bounds = array<i64: 8, 128>}]} {
    %c0 = arith.constant 0 : index
    %c0_0 = arith.constant 0 : index
    %0 = vector.load %arg1[%c0, %c0_0] : memref<8x128xf32, #tpu.memory_space<vmem>>, vector<8x128xf32>
    %c0_1 = arith.constant 0 : index
    %c0_2 = arith.constant 0 : index
    %1 = vector.load %arg2[%c0_1, %c0_2] : memref<128x128xbf16, #tpu.memory_space<vmem>>, vector<128x128xbf16>
    %c0_3 = arith.constant 0 : index
    %c0_4 = arith.constant 0 : index
    %2 = vector.load %arg3[%c0_3, %c0_4] : memref<3x128xf32, #tpu.memory_space<vmem>>, vector<3x128xf32>
    %3 = arith.truncf %0 : vector<8x128xf32> to vector<8x128xbf16>
    %cst = arith.constant dense<0.000000e+00> : vector<8x128xf32>
    %4 = tpu.matmul %3, %1, %cst {dimension_numbers = #tpu.dot_dimension_numbers<[1], [0], [0], [1], [0, 0, 1, 1], [], []>} : vector<8x128xbf16>, vector<128x128xbf16>, vector<8x128xf32> -> vector<8x128xf32>
    %5 = vector.extract_strided_slice %2 {offsets = [0, 0], sizes = [1, 128], strides = [1, 1]} : vector<3x128xf32> to vector<1x128xf32>
    %6 = vector.broadcast %5 : vector<1x128xf32> to vector<8x128xf32>
    %7 = arith.addf %4, %6 : vector<8x128xf32>
    %cst_5 = arith.constant 0.000000e+00 : f32
    %8 = vector.broadcast %cst_5 : f32 to vector<8x128xf32>
    %9 = arith.maximumf %7, %8 : vector<8x128xf32>
    %10 = vector.extract_strided_slice %2 {offsets = [1, 0], sizes = [1, 128], strides = [1, 1]} : vector<3x128xf32> to vector<1x128xf32>
    %11 = vector.extract_strided_slice %2 {offsets = [2, 0], sizes = [1, 128], strides = [1, 1]} : vector<3x128xf32> to vector<1x128xf32>
    %cst_6 = arith.constant dense<0.000000e+00> : vector<8xf32>
    %12 = vector.multi_reduction <add>, %9, %cst_6 [1] : vector<8x128xf32> to vector<8xf32>
    %13 = vector.shape_cast %12 : vector<8xf32> to vector<8x1xf32>
    %cst_7 = arith.constant 1.280000e+02 : f32
    %14 = vector.broadcast %cst_7 : f32 to vector<8x1xf32>
    %15 = arith.divf %13, %14 : vector<8x1xf32>
    %16 = vector.broadcast %15 : vector<8x1xf32> to vector<8x128xf32>
    %17 = arith.subf %9, %16 : vector<8x128xf32>
    %18 = arith.mulf %17, %17 : vector<8x128xf32>
    %cst_8 = arith.constant dense<0.000000e+00> : vector<8xf32>
    %19 = vector.multi_reduction <add>, %18, %cst_8 [1] : vector<8x128xf32> to vector<8xf32>
    %20 = vector.shape_cast %19 : vector<8xf32> to vector<8x1xf32>
    %cst_9 = arith.constant 1.280000e+02 : f32
    %21 = vector.broadcast %cst_9 : f32 to vector<8x1xf32>
    %22 = arith.divf %20, %21 : vector<8x1xf32>
    %cst_10 = arith.constant 9.99999974E-6 : f32
    %23 = vector.broadcast %cst_10 : f32 to vector<8x1xf32>
    %24 = arith.addf %22, %23 : vector<8x1xf32>
    %25 = math.rsqrt %24 : vector<8x1xf32>
    %26 = vector.broadcast %25 : vector<8x1xf32> to vector<8x128xf32>
    %27 = arith.mulf %17, %26 : vector<8x128xf32>
    %28 = vector.broadcast %10 : vector<1x128xf32> to vector<8x128xf32>
    %29 = arith.mulf %27, %28 : vector<8x128xf32>
    %30 = vector.broadcast %11 : vector<1x128xf32> to vector<8x128xf32>
    %31 = arith.addf %29, %30 : vector<8x128xf32>
    %c0_11 = arith.constant 0 : index
    %c0_12 = arith.constant 0 : index
    %32 = vector.load %arg4[%c0_11, %c0_12] : memref<128x128xbf16, #tpu.memory_space<vmem>>, vector<128x128xbf16>
    %c0_13 = arith.constant 0 : index
    %c0_14 = arith.constant 0 : index
    %33 = vector.load %arg5[%c0_13, %c0_14] : memref<3x128xf32, #tpu.memory_space<vmem>>, vector<3x128xf32>
    %34 = arith.truncf %31 : vector<8x128xf32> to vector<8x128xbf16>
    %cst_15 = arith.constant dense<0.000000e+00> : vector<8x128xf32>
    %35 = tpu.matmul %34, %32, %cst_15 {dimension_numbers = #tpu.dot_dimension_numbers<[1], [0], [0], [1], [0, 0, 1, 1], [], []>} : vector<8x128xbf16>, vector<128x128xbf16>, vector<8x128xf32> -> vector<8x128xf32>
    %36 = vector.extract_strided_slice %33 {offsets = [0, 0], sizes = [1, 128], strides = [1, 1]} : vector<3x128xf32> to vector<1x128xf32>
    %37 = vector.broadcast %36 : vector<1x128xf32> to vector<8x128xf32>
    %38 = arith.addf %35, %37 : vector<8x128xf32>
    %cst_16 = arith.constant 0.000000e+00 : f32
    %39 = vector.broadcast %cst_16 : f32 to vector<8x128xf32>
    %40 = arith.maximumf %38, %39 : vector<8x128xf32>
    %41 = arith.addf %40, %31 : vector<8x128xf32>
    %42 = vector.extract_strided_slice %33 {offsets = [1, 0], sizes = [1, 128], strides = [1, 1]} : vector<3x128xf32> to vector<1x128xf32>
    %43 = vector.extract_strided_slice %33 {offsets = [2, 0], sizes = [1, 128], strides = [1, 1]} : vector<3x128xf32> to vector<1x128xf32>
    %cst_17 = arith.constant dense<0.000000e+00> : vector<8xf32>
    %44 = vector.multi_reduction <add>, %41, %cst_17 [1] : vector<8x128xf32> to vector<8xf32>
    %45 = vector.shape_cast %44 : vector<8xf32> to vector<8x1xf32>
    %cst_18 = arith.constant 1.280000e+02 : f32
    %46 = vector.broadcast %cst_18 : f32 to vector<8x1xf32>
    %47 = arith.divf %45, %46 : vector<8x1xf32>
    %48 = vector.broadcast %47 : vector<8x1xf32> to vector<8x128xf32>
    %49 = arith.subf %41, %48 : vector<8x128xf32>
    %50 = arith.mulf %49, %49 : vector<8x128xf32>
    %cst_19 = arith.constant dense<0.000000e+00> : vector<8xf32>
    %51 = vector.multi_reduction <add>, %50, %cst_19 [1] : vector<8x128xf32> to vector<8xf32>
    %52 = vector.shape_cast %51 : vector<8xf32> to vector<8x1xf32>
    %cst_20 = arith.constant 1.280000e+02 : f32
    %53 = vector.broadcast %cst_20 : f32 to vector<8x1xf32>
    %54 = arith.divf %52, %53 : vector<8x1xf32>
    %cst_21 = arith.constant 9.99999974E-6 : f32
    %55 = vector.broadcast %cst_21 : f32 to vector<8x1xf32>
    %56 = arith.addf %54, %55 : vector<8x1xf32>
    %57 = math.rsqrt %56 : vector<8x1xf32>
    %58 = vector.broadcast %57 : vector<8x1xf32> to vector<8x128xf32>
    %59 = arith.mulf %49, %58 : vector<8x128xf32>
    %60 = vector.broadcast %42 : vector<1x128xf32> to vector<8x128xf32>
    %61 = arith.mulf %59, %60 : vector<8x128xf32>
    %62 = vector.broadcast %43 : vector<1x128xf32> to vector<8x128xf32>
    %63 = arith.addf %61, %62 : vector<8x128xf32>
    %c0_22 = arith.constant 0 : index
    %c0_23 = arith.constant 0 : index
    %64 = vector.load %arg6[%c0_22, %c0_23] : memref<128x128xbf16, #tpu.memory_space<vmem>>, vector<128x128xbf16>
    %c0_24 = arith.constant 0 : index
    %c0_25 = arith.constant 0 : index
    %65 = vector.load %arg7[%c0_24, %c0_25] : memref<1x128xf32, #tpu.memory_space<vmem>>, vector<1x128xf32>
    %66 = arith.truncf %63 : vector<8x128xf32> to vector<8x128xbf16>
    %cst_26 = arith.constant dense<0.000000e+00> : vector<8x128xf32>
    %67 = tpu.matmul %66, %64, %cst_26 {dimension_numbers = #tpu.dot_dimension_numbers<[1], [0], [0], [1], [0, 0, 1, 1], [], []>} : vector<8x128xbf16>, vector<128x128xbf16>, vector<8x128xf32> -> vector<8x128xf32>
    %68 = vector.broadcast %65 : vector<1x128xf32> to vector<8x128xf32>
    %69 = arith.addf %67, %68 : vector<8x128xf32>
    %cst_27 = arith.constant 0.000000e+00 : f32
    %70 = vector.broadcast %cst_27 : f32 to vector<8x128xf32>
    %71 = arith.maximumf %69, %70 : vector<8x128xf32>
    %c0_28 = arith.constant 0 : index
    %c0_29 = arith.constant 0 : index
    %72 = vector.load %arg8[%c0_28, %c0_29] : memref<8x128xf32, #tpu.memory_space<vmem>>, vector<8x128xf32>
    tpu.vector_store %arg8[%c0_28, %c0_29], %71 {strides = array<i32>} : memref<8x128xf32, #tpu.memory_space<vmem>>, vector<8x128xf32>,
    return
  }
  func.func @transform_0(%arg0: i32) -> (i32, i32) {
    %c0_i32 = arith.constant 0 : i32
    %c0_i32_0 = arith.constant 0 : i32
    return %arg0, %c0_i32 : i32, i32
  }
  func.func @transform_1(%arg0: i32) -> (i32, i32) {
    %c0_i32 = arith.constant 0 : i32
    %c0_i32_0 = arith.constant 0 : i32
    %c0_i32_1 = arith.constant 0 : i32
    return %c0_i32, %c0_i32_0 : i32, i32
  }
  func.func @transform_2(%arg0: i32) -> (i32, i32) {
    %c0_i32 = arith.constant 0 : i32
    %c0_i32_0 = arith.constant 0 : i32
    %c0_i32_1 = arith.constant 0 : i32
    return %c0_i32, %c0_i32_0 : i32, i32
  }
  func.func @transform_3(%arg0: i32) -> (i32, i32) {
    %c0_i32 = arith.constant 0 : i32
    %c0_i32_0 = arith.constant 0 : i32
    %c0_i32_1 = arith.constant 0 : i32
    return %c0_i32, %c0_i32_0 : i32, i32
  }
  func.func @transform_4(%arg0: i32) -> (i32, i32) {
    %c0_i32 = arith.constant 0 : i32
    %c0_i32_0 = arith.constant 0 : i32
    %c0_i32_1 = arith.constant 0 : i32
    return %c0_i32, %c0_i32_0 : i32, i32
  }
  func.func @transform_5(%arg0: i32) -> (i32, i32) {
    %c0_i32 = arith.constant 0 : i32
    %c0_i32_0 = arith.constant 0 : i32
    %c0_i32_1 = arith.constant 0 : i32
    return %c0_i32, %c0_i32_0 : i32, i32
  }
  func.func @transform_6(%arg0: i32) -> (i32, i32) {
    %c0_i32 = arith.constant 0 : i32
    %c0_i32_0 = arith.constant 0 : i32
    %c0_i32_1 = arith.constant 0 : i32
    return %c0_i32, %c0_i32_0 : i32, i32
  }
  func.func @transform_7(%arg0: i32) -> (i32, i32) {
    %c0_i32 = arith.constant 0 : i32
    %c0_i32_0 = arith.constant 0 : i32
    return %arg0, %c0_i32 : i32, i32
  }
}

module attributes {stable_mosaic.version = 11 : i64} {
  func.func @kernel(%arg0: i32, %arg1: memref<8x128xf32, #tpu.memory_space<vmem>>, %arg2: memref<128x128xbf16, #tpu.memory_space<vmem>>, %arg3: memref<3x128xf32, #tpu.memory_space<vmem>>, %arg4: memref<128x128xbf16, #tpu.memory_space<vmem>>, %arg5: memref<3x128xf32, #tpu.memory_space<vmem>>, %arg6: memref<128x128xbf16, #tpu.memory_space<vmem>>, %arg7: memref<1x128xf32, #tpu.memory_space<vmem>>, %arg8: memref<8x128xf32, #tpu.memory_space<vmem>>) attributes {dimension_semantics = [#tpu.dimension_semantics<parallel>], iteration_bounds = array<i64: 2>, scalar_prefetch = 0 : i64, scratch_operands = 0 : i64, tpu.core_type = #tpu.core_type<tc>, window_params = [{transform_indices = @transform_0, window_bounds = array<i64: 8, 128>}, {pipeline_mode = #tpu.pipeline_mode<synchronous>, transform_indices = @transform_1, window_bounds = array<i64: 128, 128>}, {pipeline_mode = #tpu.pipeline_mode<synchronous>, transform_indices = @transform_2, window_bounds = array<i64: 3, 128>}, {pipeline_mode = #tpu.pipeline_mode<synchronous>, transform_indices = @transform_3, window_bounds = array<i64: 128, 128>}, {pipeline_mode = #tpu.pipeline_mode<synchronous>, transform_indices = @transform_4, window_bounds = array<i64: 3, 128>}, {pipeline_mode = #tpu.pipeline_mode<synchronous>, transform_indices = @transform_5, window_bounds = array<i64: 128, 128>}, {pipeline_mode = #tpu.pipeline_mode<synchronous>, transform_indices = @transform_6, window_bounds = array<i64: 1, 128>}, {transform_indices = @transform_7, window_bounds = array<i64: 8, 128>}]} {
    %c0 = arith.constant 0 : index
    %c0_0 = arith.constant 0 : index
    %0 = vector.load %arg1[%c0, %c0_0] : memref<8x128xf32, #tpu.memory_space<vmem>>, vector<8x128xf32>
    %c0_1 = arith.constant 0 : index
    %c0_2 = arith.constant 0 : index
    %1 = vector.load %arg2[%c0_1, %c0_2] : memref<128x128xbf16, #tpu.memory_space<vmem>>, vector<128x128xbf16>
    %c0_3 = arith.constant 0 : index
    %c0_4 = arith.constant 0 : index
    %2 = vector.load %arg3[%c0_3, %c0_4] : memref<3x128xf32, #tpu.memory_space<vmem>>, vector<3x128xf32>
    %3 = arith.truncf %0 : vector<8x128xf32> to vector<8x128xbf16>
    %cst = arith.constant dense<0.000000e+00> : vector<8x128xf32>
    %4 = tpu.matmul %3, %1, %cst {dimension_numbers = #tpu.dot_dimension_numbers<[1], [0], [0], [1], [0, 0, 1, 1], [], []>} : vector<8x128xbf16>, vector<128x128xbf16>, vector<8x128xf32> -> vector<8x128xf32>
    %5 = vector.extract_strided_slice %2 {offsets = [0, 0], sizes = [1, 128], strides = [1, 1]} : vector<3x128xf32> to vector<1x128xf32>
    %6 = vector.broadcast %5 : vector<1x128xf32> to vector<8x128xf32>
    %7 = arith.addf %4, %6 : vector<8x128xf32>
    %cst_5 = arith.constant 0.000000e+00 : f32
    %8 = vector.broadcast %cst_5 : f32 to vector<8x128xf32>
    %9 = arith.maximumf %7, %8 : vector<8x128xf32>
    %10 = vector.extract_strided_slice %2 {offsets = [1, 0], sizes = [1, 128], strides = [1, 1]} : vector<3x128xf32> to vector<1x128xf32>
    %11 = vector.extract_strided_slice %2 {offsets = [2, 0], sizes = [1, 128], strides = [1, 1]} : vector<3x128xf32> to vector<1x128xf32>
    %cst_6 = arith.constant dense<0.000000e+00> : vector<8xf32>
    %12 = vector.multi_reduction <add>, %9, %cst_6 [1] : vector<8x128xf32> to vector<8xf32>
    %13 = vector.shape_cast %12 : vector<8xf32> to vector<8x1xf32>
    %cst_7 = arith.constant 1.280000e+02 : f32
    %14 = vector.broadcast %cst_7 : f32 to vector<8x1xf32>
    %15 = arith.divf %13, %14 : vector<8x1xf32>
    %16 = vector.broadcast %15 : vector<8x1xf32> to vector<8x128xf32>
    %17 = arith.subf %9, %16 : vector<8x128xf32>
    %18 = arith.mulf %17, %17 : vector<8x128xf32>
    %cst_8 = arith.constant dense<0.000000e+00> : vector<8xf32>
    %19 = vector.multi_reduction <add>, %18, %cst_8 [1] : vector<8x128xf32> to vector<8xf32>
    %20 = vector.shape_cast %19 : vector<8xf32> to vector<8x1xf32>
    %cst_9 = arith.constant 1.280000e+02 : f32
    %21 = vector.broadcast %cst_9 : f32 to vector<8x1xf32>
    %22 = arith.divf %20, %21 : vector<8x1xf32>
    %cst_10 = arith.constant 9.99999974E-6 : f32
    %23 = vector.broadcast %cst_10 : f32 to vector<8x1xf32>
    %24 = arith.addf %22, %23 : vector<8x1xf32>
    %25 = math.rsqrt %24 : vector<8x1xf32>
    %26 = vector.broadcast %25 : vector<8x1xf32> to vector<8x128xf32>
    %27 = arith.mulf %17, %26 : vector<8x128xf32>
    %28 = vector.broadcast %10 : vector<1x128xf32> to vector<8x128xf32>
    %29 = arith.mulf %27, %28 : vector<8x128xf32>
    %30 = vector.broadcast %11 : vector<1x128xf32> to vector<8x128xf32>
    %31 = arith.addf %29, %30 : vector<8x128xf32>
    %c0_11 = arith.constant 0 : index
    %c0_12 = arith.constant 0 : index
    %32 = vector.load %arg4[%c0_11, %c0_12] : memref<128x128xbf16, #tpu.memory_space<vmem>>, vector<128x128xbf16>
    %c0_13 = arith.constant 0 : index
    %c0_14 = arith.constant 0 : index
    %33 = vector.load %arg5[%c0_13, %c0_14] : memref<3x128xf32, #tpu.memory_space<vmem>>, vector<3x128xf32>
    %34 = arith.truncf %31 : vector<8x128xf32> to vector<8x128xbf16>
    %cst_15 = arith.constant dense<0.000000e+00> : vector<8x128xf32>
    %35 = tpu.matmul %34, %32, %cst_15 {dimension_numbers = #tpu.dot_dimension_numbers<[1], [0], [0], [1], [0, 0, 1, 1], [], []>} : vector<8x128xbf16>, vector<128x128xbf16>, vector<8x128xf32> -> vector<8x128xf32>
    %36 = vector.extract_strided_slice %33 {offsets = [0, 0], sizes = [1, 128], strides = [1, 1]} : vector<3x128xf32> to vector<1x128xf32>
    %37 = vector.broadcast %36 : vector<1x128xf32> to vector<8x128xf32>
    %38 = arith.addf %35, %37 : vector<8x128xf32>
    %cst_16 = arith.constant 0.000000e+00 : f32
    %39 = vector.broadcast %cst_16 : f32 to vector<8x128xf32>
    %40 = arith.maximumf %38, %39 : vector<8x128xf32>
    %41 = arith.addf %40, %31 : vector<8x128xf32>
    %42 = vector.extract_strided_slice %33 {offsets = [1, 0], sizes = [1, 128], strides = [1, 1]} : vector<3x128xf32> to vector<1x128xf32>
    %43 = vector.extract_strided_slice %33 {offsets = [2, 0], sizes = [1, 128], strides = [1, 1]} : vector<3x128xf32> to vector<1x128xf32>
    %cst_17 = arith.constant dense<0.000000e+00> : vector<8xf32>
    %44 = vector.multi_reduction <add>, %41, %cst_17 [1] : vector<8x128xf32> to vector<8xf32>
    %45 = vector.shape_cast %44 : vector<8xf32> to vector<8x1xf32>
    %cst_18 = arith.constant 1.280000e+02 : f32
    %46 = vector.broadcast %cst_18 : f32 to vector<8x1xf32>
    %47 = arith.divf %45, %46 : vector<8x1xf32>
    %48 = vector.broadcast %47 : vector<8x1xf32> to vector<8x128xf32>
    %49 = arith.subf %41, %48 : vector<8x128xf32>
    %50 = arith.mulf %49, %49 : vector<8x128xf32>
    %cst_19 = arith.constant dense<0.000000e+00> : vector<8xf32>
    %51 = vector.multi_reduction <add>, %50, %cst_19 [1] : vector<8x128xf32> to vector<8xf32>
    %52 = vector.shape_cast %51 : vector<8xf32> to vector<8x1xf32>
    %cst_20 = arith.constant 1.280000e+02 : f32
    %53 = vector.broadcast %cst_20 : f32 to vector<8x1xf32>
    %54 = arith.divf %52, %53 : vector<8x1xf32>
    %cst_21 = arith.constant 9.99999974E-6 : f32
    %55 = vector.broadcast %cst_21 : f32 to vector<8x1xf32>
    %56 = arith.addf %54, %55 : vector<8x1xf32>
    %57 = math.rsqrt %56 : vector<8x1xf32>
    %58 = vector.broadcast %57 : vector<8x1xf32> to vector<8x128xf32>
    %59 = arith.mulf %49, %58 : vector<8x128xf32>
    %60 = vector.broadcast %42 : vector<1x128xf32> to vector<8x128xf32>
    %61 = arith.mulf %59, %60 : vector<8x128xf32>
    %62 = vector.broadcast %43 : vector<1x128xf32> to vector<8x128xf32>
    %63 = arith.addf %61, %62 : vector<8x128xf32>
    %c0_22 = arith.constant 0 : index
    %c0_23 = arith.constant 0 : index
    %64 = vector.load %arg6[%c0_22, %c0_23] : memref<128x128xbf16, #tpu.memory_space<vmem>>, vector<128x128xbf16>
    %c0_24 = arith.constant 0 : index
    %c0_25 = arith.constant 0 : index
    %65 = vector.load %arg7[%c0_24, %c0_25] : memref<1x128xf32, #tpu.memory_space<vmem>>, vector<1x128xf32>
    %66 = arith.truncf %63 : vector<8x128xf32> to vector<8x128xbf16>
    %cst_26 = arith.constant dense<0.000000e+00> : vector<8x128xf32>
    %67 = tpu.matmul %66, %64, %cst_26 {dimension_numbers = #tpu.dot_dimension_numbers<[1], [0], [0], [1], [0, 0, 1, 1], [], []>} : vector<8x128xbf16>, vector<128x128xbf16>, vector<8x128xf32> -> vector<8x128xf32>
    %68 = vector.broadcast %65 : vector<1x128xf32> to vector<8x128xf32>
    %69 = arith.addf %67, %68 : vector<8x128xf32>
    %cst_27 = arith.constant 0.000000e+00 : f32
    %70 = vector.broadcast %cst_27 : f32 to vector<8x128xf32>
    %71 = arith.maximumf %69, %70 : vector<8x128xf32>
    %c0_28 = arith.constant 0 : index
    %c0_29 = arith.constant 0 : index
    %72 = vector.load %arg8[%c0_28, %c0_29] : memref<8x128xf32, #tpu.memory_space<vmem>>, vector<8x128xf32>
    tpu.vector_store %arg8[%c0_28, %c0_29], %71 {strides = array<i32>} : memref<8x128xf32, #tpu.memory_space<vmem>>, vector<8x128xf32>,
    return
  }
  func.func @transform_0(%arg0: i32) -> (i32, i32) {
    %c0_i32 = arith.constant 0 : i32
    %c0_i32_0 = arith.constant 0 : i32
    return %arg0, %c0_i32 : i32, i32
  }
  func.func @transform_1(%arg0: i32) -> (i32, i32) {
    %c0_i32 = arith.constant 0 : i32
    %c0_i32_0 = arith.constant 0 : i32
    %c0_i32_1 = arith.constant 0 : i32
    return %c0_i32, %c0_i32_0 : i32, i32
  }
  func.func @transform_2(%arg0: i32) -> (i32, i32) {
    %c0_i32 = arith.constant 0 : i32
    %c0_i32_0 = arith.constant 0 : i32
    %c0_i32_1 = arith.constant 0 : i32
    return %c0_i32, %c0_i32_0 : i32, i32
  }
  func.func @transform_3(%arg0: i32) -> (i32, i32) {
    %c0_i32 = arith.constant 0 : i32
    %c0_i32_0 = arith.constant 0 : i32
    %c0_i32_1 = arith.constant 0 : i32
    return %c0_i32, %c0_i32_0 : i32, i32
  }
  func.func @transform_4(%arg0: i32) -> (i32, i32) {
    %c0_i32 = arith.constant 0 : i32
    %c0_i32_0 = arith.constant 0 : i32
    %c0_i32_1 = arith.constant 0 : i32
    return %c0_i32, %c0_i32_0 : i32, i32
  }
  func.func @transform_5(%arg0: i32) -> (i32, i32) {
    %c0_i32 = arith.constant 0 : i32
    %c0_i32_0 = arith.constant 0 : i32
    %c0_i32_1 = arith.constant 0 : i32
    return %c0_i32, %c0_i32_0 : i32, i32
  }
  func.func @transform_6(%arg0: i32) -> (i32, i32) {
    %c0_i32 = arith.constant 0 : i32
    %c0_i32_0 = arith.constant 0 : i32
    %c0_i32_1 = arith.constant 0 : i32
    return %c0_i32, %c0_i32_0 : i32, i32
  }
  func.func @transform_7(%arg0: i32) -> (i32, i32) {
    %c0_i32 = arith.constant 0 : i32
    %c0_i32_0 = arith.constant 0 : i32
    return %arg0, %c0_i32 : i32, i32
  }
}

</mosaic_0001>

<bundles_post_ra>
// kernel: tpu_custom_call.1
= control target key start
LH: loop header
LB: loop body
LE: loop exit
PB: predicated region body
PF: predicated region fallthrough
CT: control target
= control target key end

     0   :  { %s1552_s0 = inlined_call_operand.hbm [shape: f32[16,128], index: 0, kind: input, shape index: {}]   ;;  %s1553_s1 = inlined_call_operand.hbm [shape: bf16[128,128], index: 1, kind: input, shape index: {}]   ;;  %s1554_s2 = inlined_call_operand.hbm [shape: f32[3,128], index: 2, kind: input, shape index: {}]   ;;  %s1555_s3 = inlined_call_operand.hbm [shape: bf16[128,128], index: 3, kind: input, shape index: {}]   ;;  %s1556_s4 = inlined_call_operand.hbm [shape: f32[3,128], index: 4, kind: input, shape index: {}]   ;;  %s1557_s5 = inlined_call_operand.hbm [shape: bf16[128,128], index: 5, kind: input, shape index: {}]   ;;  %s1558_s6 = inlined_call_operand.vmem [shape: f32[1,128], index: 6, kind: input, shape index: {}]   ;;  %s1559_s7 = inlined_call_operand.hbm [shape: f32[16,128], index: 7, kind: output, shape index: {}]  }
   0x1   :  { %1560 = sst [smem:[#allocation19_spill]] %s1553_s1 }
   0x2   :  { %12 = vsyncpa [#allocation3], 0 }
   0x3   :  { %14 = vsyncpa [#allocation3 + $0x1], 0 }
   0x4   :  { %15 = vsyncpa [#allocation6], 0 }
   0x5   :  { %16 = vsyncpa [#allocation9], 0 }
   0x6   :  { %17 = vsyncpa [#allocation12], 0 }
   0x7   :  { %18 = vsyncpa [#allocation4], 0 }
   0x8   :  { %20 = vsyncpa [#allocation4 + $0x1], 0  ;;  %s1369_s24 = smov 0   ;;  %s1371_s25 = smov 0  }
   0x9   :  { %s1373_s26 = smov 0   ;;  %s1375_s27 = smov 0  }
   0xa LB: > { %s1561_s1 = sld [smem:[#allocation19_spill]]  ;;  %s1393_s8 = sadd.s32 4294967295, %s1319_s27   ;;  %s1319_s27 = sphi %s1375_s27, %s1572_s27   ;;  %s1315_s26 = sphi %s1373_s26, %s1571_s26   ;;  %s1311_s25 = sphi %s1371_s25, %s1570_s25   ;;  %s1307_s24 = sphi %s1369_s24, %s1569_s24  }
   0xb   : > { %p813_p0 = scmp.ge.s32.totalorder %s1319_s27, 1  ;;  %p47_p1 = scmp.eq.s32.totalorder %s1393_s8, 0 }
   0xc   : > { %p209_p2 = scmp.lt.s32.totalorder %s1319_s27, 3  ;;  %s1321_s10 = smov [#allocation5]  }
   0xd   : > { %s222_s11 = sshll.u32 %s1321_s10, 4  ;;  %s246_s14 = sshll.u32 %s1555_s3, 4  ;;  %s223_s11 = int_to_ptr.vmem [resolvable:$true] %s222_s11  ;;  %s247_s14 = int_to_ptr.hbm [resolvable:$true] %s246_s14 }
   0xe   : > { %p1398_p3 = pnand %p813_p0, %p209_p2  ;;  %s235_s18 = sshll.u32 %s1554_s2, 4  ;;  %s236_s18 = int_to_ptr.hbm [resolvable:$true] %s235_s18 }
   0xf   : > { %s1322_s19 = smov [#allocation8]   ;;  %s1323_s21 = smov 64  }
  0x10   : > { %s220_s30 = sshll.u32 %s1561_s1, 4  ;;  %p978_p4 = pneg %p1398_p3  ;;  %s221_s30 = int_to_ptr.hbm [resolvable:$true] %s220_s30 }
  0x11   : > { %s248_s20 = sshll.u32 %s1322_s19, 4  ;;  %s1324_s22 = smov 4   ;;  %s249_s20 = int_to_ptr.vmem [resolvable:$true] %s248_s20 }
  0x12   : > { %p1410_p6 = pnand %p978_p4, %p47_p1  ;;  %s261_s29 = sshll.u32 %s1556_s4, 4  ;;  %s262_s29 = int_to_ptr.hbm [resolvable:$true] %s261_s29 }
  0x13   : > { %s1325_s10 = smov [#allocation7]   ;;  %s272_s16 = sshll.u32 %s1557_s5, 4  ;;  %s273_s16 = int_to_ptr.hbm [resolvable:$true] %s272_s16 }
  0x14   : > { %981 = dma.hbm_to_vmem [thread:$0]  (!%p1410_p6), %s221_s30, 1024, %s223_s11, [#allocation6], %s1323_s21, %s1323_s21, %s1324_s22  }
  0x15   : > { %987 = dma.hbm_to_vmem [thread:$0]  (!%p1410_p6), %s247_s14, 1024, %s249_s20, [#allocation9], %s1323_s21, %s1323_s21, %s1324_s22  }
  0x16   : > { %s237_s12 = sshll.u32 %s1325_s10, 4  ;;  %s1326_s30 = smov [#allocation10]   ;;  %s238_s12 = int_to_ptr.vmem [resolvable:$true] %s237_s12 }
  0x17   : > { %984 = dma.hbm_to_vmem [thread:$0]  (!%p1410_p6), %s236_s18, 64, %s238_s12, [#allocation6]  }
  0x18   : > { %s263_s11 = sshll.u32 %s1326_s30, 4  ;;  %s1327_s17 = smov [#allocation11]   ;;  %s264_s11 = int_to_ptr.vmem [resolvable:$true] %s263_s11 }
  0x19   : > { %990 = dma.hbm_to_vmem [thread:$0]  (!%p1410_p6), %s262_s29, 64, %s264_s11, [#allocation9]  }
  0x1a   : > { %s274_s19 = sshll.u32 %s1327_s17, 4  ;;  %s812_s18 = sadd.s32 4294967294, %s1319_s27   ;;  %s275_s19 = int_to_ptr.vmem [resolvable:$true] %s274_s19 }
  0x1b   : > { %993 = dma.hbm_to_vmem [thread:$0]  (!%p1410_p6), %s273_s16, 1024, %s275_s19, [#allocation12], %s1323_s21, %s1323_s21, %s1324_s22  }
  0x1c   : > { %s1435_s20 = sadd.s32 1, %s1319_s27   ;;  %s33_s23 = sadd.s32 1, %s1315_s26 }
  0x1d   : > { %s30_s28 = ssub.s32 %s1319_s27, %s1435_s20  ;;  %p40_p7 = scmp.ne.s32.totalorder %s1315_s26, %s1311_s25 }
  0x1e   : > { %p31_p8 = scmp.eq.s32.totalorder %s30_s28, 0  ;;  %p41_p9 = scmp.eq.s32.totalorder %s1319_s27, 0 }
  0x1f   : > { %p46_p10 = scmp.ne.s32.totalorder %s1311_s25, %s1307_s24  ;;  %p196_p11 = scmp.eq.s32.totalorder %s1393_s8, 1 }
  0x20   : > { %s1447_s29 = scalar_select %p31_p8, %s1315_s26, %s33_s23  }
  0x21   : > { %p1451_p12 = por %p47_p1, %p46_p10  ;;  %p1455_p13 = por %p196_p11, %p40_p7 }
  0x22   : > { %p202_p0 = scmp.eq.s32.totalorder %s812_s18, 1  ;;  %p42_p2 = por %p41_p9, %p40_p7 }
  0x23   : > { %s291_s22 = sand.u32 1, %s1315_s26   ;;  %p1007_p6 = scmp.lt.s32.totalorder %s1319_s27, 2 }
  0x24   : > { %p1460_p4 = por %p202_p0, %p46_p10  ;;  %s820_s12 = sshll.u32 %s291_s22, 3 }
  0x25   : > { %s821_s30 = sshll.u32 %s1319_s27, 3  ;;  %s295_s17 = scalar_lea.vmem [#allocation2], %s820_s12 }
  0x26   : > { %s299_s14 = scalar_lea.hbm %s1552_s0, %s821_s30  ;;  %s303_s19 = sshll.u32 %s295_s17, 4  ;;  %s304_s19 = int_to_ptr.vmem [resolvable:$true] %s303_s19 }
  0x27   : > { %s301_s16 = sshll.u32 %s299_s14, 4  ;;  %p1469_p8 = pnand %p1007_p6, %p42_p2  ;;  %s302_s16 = int_to_ptr.hbm [resolvable:$true] %s301_s16 }
  0x28   : > { %s292_s23 = scalar_lea.sflag [#allocation3], %s291_s22  ;;  %s1211_s28 = sshra.s32 %s302_s16, 4  ;;  %s1212_s28 = int_to_ptr.hbm [resolvable:$true] %s1211_s28 }
  0x29   : > { %s1213_s1 = scalar_lea.hbm %s1212_s28, 8  ;;  %p1215_p9 = pneg %p1469_p8 }
  0x2a   : > { %p1214_p7 = scmp.ne.s32.totalorder %s1212_s28, %s1213_s1  ;;  %s1218_s12 = scalar_lea.hbm %s1552_s0, 16 }
  0x2b   : > { %p1219_p0 = scmp.lt.s32.totalorder %s1212_s28, %s1552_s0  ;;  %p1220_p2 = scmp.lt.s32.totalorder %s1218_s12, %s1213_s1 }
  0x2c   : > { %p1216_p10 = pnand %p1215_p9, %p1214_p7 }
  0x2d   : > { %p1221_p6 = por %p1220_p2, %p1219_p0 }
  0x2e   : > { %p1217_p11 = pneg %p1216_p10 }
  0x30   : > { %p1222_p5 = pnand %p1221_p6, %p1217_p11 }
  0x32   : > { %1225 = shalt.err (!%p1222_p5)
}
  0x33   : > { %997 = dma.hbm_to_vmem [thread:$0]  (!%p1469_p8), %s302_s16, 128, %s304_s19, %s292_s23  }
  0x34   : > { %312 = sbr.rel (%p1398_p3) target bundleno = 1034 (0x40a), region = 48  ;;  %s1486_s22 = sand.u32 (!%p1398_p3), 1, %s1311_s25  }
  0x35   : > { %s823_s17 = sshll.u32 (!%p1398_p3), %s1486_s22, 3  ;;  %s315_s30 = scalar_lea.sflag (!%p1398_p3), [#allocation3], %s1486_s22 }
  0x36   : > { %s318_s1 = scalar_lea.vmem (!%p1398_p3), [#allocation2], %s823_s17 }
  0x39   : > { %1286 = dma.done.wait (%p1451_p12), %s315_s30, 128  }
  0x3a   : > { %1288 = vsyncadd (%p1451_p12), %s315_s30, 4294967168 }
  0x3b   : > { %1290 = dma.done.wait (%p47_p1), [#allocation6], 1088  }
  0x3c   : > { %1292 = vsyncadd (%p47_p1), [#allocation6], 4294966208 }
  0x3d   : > { %1294 = dma.done.wait (%p47_p1), [#allocation9], 1088  }
  0x3e   : > { %1296 = vsyncadd (%p47_p1), [#allocation9], 4294966208 }
  0x3f   : > { %1298 = dma.done.wait (%p47_p1), [#allocation12], 1024  }
  0x40   : > { %1300 = vsyncadd (%p47_p1), [#allocation12], 4294966272  ;;  %v937_v0 = vld [vmem:[#allocation5 + $0x38] sm:$0xff]  ;;  %v936_v1 = vld [vmem:[#allocation5 + $0x30] sm:$0xff]  ;;  %v1328_v16 = vmov 128.0   ;;  %s927_s9 = sshll.u32 %s1393_s8, 3 }
  0x41   : > { %443 = vmatpush.bf16.msra.mxu0 %v937_v0  ;;  %v935_v2 = vld [vmem:[#allocation5 + $0x28] sm:$0xff]  ;;  %v934_v3 = vld [vmem:[#allocation5 + $0x20] sm:$0xff]  ;;  %v933_v4 = vld [vmem:[#allocation5 + $0x18] sm:$0xff]  ;;  %1055 = vrcp.f32 %v1328_v16  ;;  %s689_s23 = scalar_lea.hbm %s1559_s7, %s927_s9  ;;  %s374_s28 = scalar_lea.vmem [#allocation13], %s823_s17 }
  0x42   : > { %v932_v5 = vld [vmem:[#allocation5 + $0x10] sm:$0xff]  ;;  %v931_v6 = vld [vmem:[#allocation5 + $0x8] sm:$0xff]  ;;  %v930_v7 = vld [vmem:[#allocation5] sm:$0xff]  ;;  %s691_s11 = sshll.u32 %s374_s28, 4  ;;  %s693_s12 = sshll.u32 %s689_s23, 4  ;;  %s692_s11 = int_to_ptr.vmem [resolvable:$true] %s691_s11  ;;  %s694_s12 = int_to_ptr.hbm [resolvable:$true] %s693_s12 }
  0x43   : > { %v375_v8 = vld [vmem:[%s318_s1] sm:$0xff]  ;;  %v392_v10 = vld [vmem:[#allocation7] sm:$0x7]  ;;  %v942_v30 = vld [vmem:[#allocation8 + $0x20] sm:$0xff]  ;;  %s679_s8 = scalar_lea.sflag [#allocation4], %s1486_s22  ;;  %s1255_s13 = sshra.s32 %s694_s12, 4  ;;  %s1256_s13 = int_to_ptr.hbm [resolvable:$true] %s1255_s13 }
  0x44   : > { %v393_v9 = vpack.c.bf16 %v375_v8, %v375_v8  ;;  %v394_v11 = vperm.slane %v392_v10, 0  ;;  %v945_v17 = vld [vmem:[#allocation8 + $0x38] sm:$0xff]  ;;  %v944_v28 = vld [vmem:[#allocation8 + $0x30] sm:$0xff]  ;;  %v943_v29 = vld [vmem:[#allocation8 + $0x28] sm:$0xff]  ;;  %v484_v44 = vperm.slane %v392_v10, 1  ;;  %v486_v47 = vperm.slane %v392_v10, 2  ;;  %p1262_p12 = scmp.lt.s32.totalorder %s1256_s13, %s1559_s7 }
  0x45   : > { %444 = vmatpush.bf16.msra.mxu0 %v936_v1  ;;  %555 = vmatpush.bf16.msra.mxu1 %v945_v17  ;;  %v941_v31 = vld [vmem:[#allocation8 + $0x18] sm:$0xff]  ;;  %v940_v32 = vld [vmem:[#allocation8 + $0x10] sm:$0xff]  ;;  %v939_v33 = vld [vmem:[#allocation8 + $0x8] sm:$0xff]  ;;  %s1257_s14 = scalar_lea.hbm %s1256_s13, 8  ;;  %s1261_s9 = scalar_lea.hbm %s1559_s7, 16 }
  0x46   : > { %v938_v34 = vld [vmem:[#allocation8] sm:$0xff]  ;;  %v952_v63 = vld [vmem:[#allocation11 + $0x30] sm:$0xff]  ;;  %v951_v0 = vld [vmem:[#allocation11 + $0x28] sm:$0xff]  ;;  %p1258_p1 = scmp.ne.s32.totalorder %s1256_s13, %s1257_s14  ;;  %p1263_p8 = scmp.lt.s32.totalorder %s1261_s9, %s1257_s14 }
  0x47   : > { %v1056_v18 = vpop.eup %1055  ;;  %v504_v51 = vld [vmem:[#allocation10] sm:$0x7]  ;;  %v950_v1 = vld [vmem:[#allocation11 + $0x20] sm:$0xff] }
  0x48   : > { %v460_v19 = vmul.f32 128.0, %v1056_v18  ;;  %vm464_vm0 = vweird.f32 %v1056_v18  ;;  %v506_v52 = vperm.slane %v504_v51, 0  ;;  %v953_v58 = vld [vmem:[#allocation11 + $0x38] sm:$0xff]  ;;  %p1259_p3 = pnand %p1258_p1, %p1455_p13  ;;  %p1264_p7 = por %p1263_p8, %p1262_p12 }
  0x49   : > { %445 = vmatpush.bf16.msra.mxu0 %v935_v2  ;;  %556 = vmatpush.bf16.msra.mxu1 %v944_v28  ;;  %v949_v2 = vld [vmem:[#allocation11 + $0x18] sm:$0xff] }
  0x4a   : > { %v461_v20 = vsub.f32 1.0, %v460_v19  ;;  %663 = vmatpush.bf16.msra.mxu2 %v953_v58  ;;  %p1260_p5 = pneg %p1259_p3 }
  0x4c   : > { %v462_v21 = vmul.f32 %v1056_v18, %v461_v20  ;;  %p1265_p9 = pnand %p1264_p7, %p1260_p5 }
  0x4d   : > { %446 = vmatpush.bf16.msra.mxu0 %v934_v3  ;;  %557 = vmatpush.bf16.msra.mxu1 %v943_v29  ;;  %v948_v3 = vld [vmem:[#allocation11 + $0x10] sm:$0xff] }
  0x4e   : > { %v463_v22 = vadd.f32 %v1056_v18, %v462_v21  ;;  %664 = vmatpush.bf16.msra.mxu2 %v952_v63 }
  0x50   : > { %v1508_v23 = vsel %vm464_vm0, %v1056_v18, %v463_v22  ;;  %v592_v18 = vperm.slane %v504_v51, 2  ;;  %v1054_v22 = vld [vmem:[%s1558_s6] ss:$0 sm:$0xff] }
  0x51   : > { %447 = vmatpush.bf16.msra.mxu0 %v933_v4  ;;  %558 = vmatpush.bf16.msra.mxu1 %v942_v30  ;;  %v947_v4 = vld [vmem:[#allocation11 + $0x8] sm:$0xff] }
  0x52   : > { %665 = vmatpush.bf16.msra.mxu2 %v951_v0 }
  0x55   : > { %448 = vmatpush.bf16.msra.mxu0 %v932_v5  ;;  %559 = vmatpush.bf16.msra.mxu1 %v941_v31  ;;  %v946_v5 = vld [vmem:[#allocation11] sm:$0xff] }
  0x56   : > { %666 = vmatpush.bf16.msra.mxu2 %v950_v1 }
  0x59   : > { %449 = vmatpush.bf16.msra.mxu0 %v931_v6  ;;  %560 = vmatpush.bf16.msra.mxu1 %v940_v32 }
  0x5a   : > { %667 = vmatpush.bf16.msra.mxu2 %v949_v2 }
  0x5d   : > { %450 = vmatpush.bf16.msra.mxu0 %v930_v7  ;;  %561 = vmatpush.bf16.msra.mxu1 %v939_v33 }
  0x5e   : > { %668 = vmatpush.bf16.msra.mxu2 %v948_v3 }
  0x60   : > { %451 = vmatmul.bf16.vlgmr.msra.gmra.mxu0 %v393_v9 }
  0x61   : > { %562 = vmatpush.bf16.msra.mxu1 %v938_v34 }
  0x62   : > { %669 = vmatpush.bf16.msra.mxu2 %v947_v4 }
  0x66   : > { %670 = vmatpush.bf16.msra.mxu2 %v946_v5 }
  0xdd   : > { %v452_v12 = vpop.f32.mrf.mxu0 }
  0xde   : > { %v453_v13 = vadd.f32 %v452_v12, %v394_v11 }
  0xe0   : > { %v456_v14 = vmax.f32 %v453_v13, 0.0 }
  0xe2   : > { %457 = vadd.xlane.f32.xlu0 %v456_v14 }
  0xe5   : > { %v454_v15 = vpop.f32.mrf.mxu0 }
  0xe6   : > { %v590_v15 = vperm.slane %v504_v51, 1 }
 0x155   : > { %v458_v24 = vpop.xlane.xlu0 %457 }
 0x156   : > { %v466_v25 = vmul.f32 %v1508_v23, %v458_v24 }
 0x158   : > { %v467_v26 = vsub.f32 %v456_v14, %v466_v25 }
 0x15a   : > { %v468_v27 = vmul.f32 %v467_v26, %v467_v26 }
 0x15c   : > { %469 = vadd.xlane.f32.xlu0 %v468_v27 }
 0x1cf   : > { %v470_v35 = vpop.xlane.xlu0 %469 }
 0x1d0   : > { %v471_v36 = vmul.f32 %v470_v35, %v1508_v23 }
 0x1d2   : > { %v472_v37 = vadd.f32 1e-05, %v471_v36 }
 0x1d4   : > { %1057 = vrsqrt.f32 %v472_v37  ;;  %vm479_vm2 = vweird.f32 %v472_v37 }
 0x1da   : > { %v1058_v38 = vpop.eup %1057 }
 0x1db   : > { %v474_v39 = vmul.f32 %v1058_v38, %v472_v37  ;;  %vm480_vm1 = vweird.f32 %v1058_v38 }
 0x1dc   : > { %vm481_vm3 = vmor %vm479_vm2, %vm480_vm1 }
 0x1dd   : > { %v475_v40 = vmul.f32 %v1058_v38, %v474_v39 }
 0x1df   : > { %v476_v41 = vmul.f32 0.5, %v475_v40 }
 0x1e1   : > { %v477_v42 = vsub.f32 1.5, %v476_v41 }
 0x1e3   : > { %v478_v43 = vmul.f32 %v1058_v38, %v477_v42 }
 0x1e5   : > { %v482_v45 = vsel %vm481_vm3, %v1058_v38, %v478_v43 }
 0x1e6   : > { %v483_v46 = vmul.f32 %v482_v45, %v467_v26 }
 0x1e8   : > { %v485_v48 = vmul.f32 %v484_v44, %v483_v46 }
 0x1ea   : > { %v487_v49 = vadd.f32 %v486_v47, %v485_v48 }
 0x1ec   : > { %v505_v50 = vpack.c.bf16 %v487_v49, %v487_v49 }
 0x1ee   : > { %563 = vmatmul.bf16.vlgmr.msra.gmra.mxu1 %v505_v50 }
 0x26b   : > { %v564_v53 = vpop.f32.mrf.mxu1 }
 0x26c   : > { %v565_v54 = vadd.f32 %v564_v53, %v506_v52 }
 0x26e   : > { %v568_v55 = vmax.f32 %v565_v54, 0.0 }
 0x270   : > { %v569_v56 = vadd.f32 %v568_v55, %v487_v49 }
 0x272   : > { %570 = vadd.xlane.f32.xlu1 %v569_v56 }
 0x273   : > { %v566_v57 = vpop.f32.mrf.mxu1 }
 0x2e5   : > { %v571_v59 = vpop.xlane.xlu1 %570 }
 0x2e6   : > { %v572_v60 = vmul.f32 %v571_v59, %v1508_v23 }
 0x2e8   : > { %v573_v61 = vsub.f32 %v569_v56, %v572_v60 }
 0x2ea   : > { %v574_v62 = vmul.f32 %v573_v61, %v573_v61 }
 0x2ec   : > { %575 = vadd.xlane.f32.xlu1 %v574_v62 }
 0x35f   : > { %v576_v6 = vpop.xlane.xlu1 %575 }
 0x360   : > { %v577_v7 = vmul.f32 %v576_v6, %v1508_v23 }
 0x362   : > { %v578_v8 = vadd.f32 1e-05, %v577_v7 }
 0x364   : > { %1059 = vrsqrt.f32 %v578_v8  ;;  %vm585_vm5 = vweird.f32 %v578_v8 }
 0x36a   : > { %v1060_v9 = vpop.eup %1059 }
 0x36b   : > { %v580_v10 = vmul.f32 %v1060_v9, %v578_v8  ;;  %vm586_vm4 = vweird.f32 %v1060_v9 }
 0x36c   : > { %vm587_vm6 = vmor %vm585_vm5, %vm586_vm4 }
 0x36d   : > { %v581_v11 = vmul.f32 %v1060_v9, %v580_v10 }
 0x36f   : > { %v582_v12 = vmul.f32 0.5, %v581_v11 }
 0x371   : > { %v583_v13 = vsub.f32 1.5, %v582_v12 }
 0x373   : > { %v584_v14 = vmul.f32 %v1060_v9, %v583_v13 }
 0x375   : > { %v588_v16 = vsel %vm587_vm6, %v1060_v9, %v584_v14 }
 0x376   : > { %v589_v17 = vmul.f32 %v588_v16, %v573_v61 }
 0x378   : > { %v591_v19 = vmul.f32 %v590_v15, %v589_v17 }
 0x37a   : > { %v593_v20 = vadd.f32 %v592_v18, %v591_v19 }
 0x37c   : > { %v611_v21 = vpack.c.bf16 %v593_v20, %v593_v20 }
 0x37e   : > { %671 = vmatmul.bf16.vlgmr.msra.gmra.mxu2 %v611_v21 }
 0x401   : > { %v672_v23 = vpop.f32.mrf.mxu2 }
 0x402   : > { %v673_v24 = vadd.f32 %v1054_v22, %v672_v23 }
 0x404   : > { %v676_v25 = vmax.f32 %v673_v24, 0.0 }
 0x406   : > { %677 = vst [vmem:[%s374_s28] sm:$0xff] %v676_v25 }
 0x407   : > { %1268 = shalt.err (!%p1265_p9)
}
 0x408   : > { %976 = dma.vmem_to_hbm [thread:$0]  (%p1455_p13), %s692_s11, 128, %s694_s12, %s679_s8  }
 0x409   : > { %v674_v26 = vpop.f32.mrf.mxu2 }
 0x40a PF: > { %s705_s22 = sand.u32 1, %s1307_s24   ;;  %p1568_p10 = scmp.ge.s32.totalorder %s1319_s27, 2 }
 0x40b   : > { %s706_s16 = scalar_lea.sflag [#allocation4], %s705_s22 }
 0x40c   : > { %p999_p11 = pnand %p1568_p10, %p1460_p4 }
 0x40e   : > { %p1000_p0 = pneg %p999_p11 }
 0x410   : > { %1302 = dma.done.wait (%p1000_p0), %s706_s16, 128  }
 0x411   : > { %1304 = vsyncadd (%p1000_p0), %s706_s16, 4294967168  ;;  %p23_p2 = scmp.ge.s32.totalorder %s1435_s20, 4   ;;  %s1569_s24 = smov %s1311_s25 }
 0x412   : > { %s1570_s25 = smov %s1315_s26  ;;  %s1571_s26 = smov %s1447_s29 }
 0x413   : > { %s1572_s27 = smov %s1435_s20  ;;  %25 = sbr.rel (!%p23_p2) target bundleno = 10 (0xa), region = 113 }
 0x418   :  { %712 = vsyncpa [#allocation3], 1 }
 0x419   :  { %714 = vsyncpa [#allocation3 + $0x1], 1 }
 0x41a   :  { %715 = vsyncpa [#allocation6], 1 }
 0x41b   :  { %716 = vsyncpa [#allocation9], 1 }
 0x41c   :  { %717 = vsyncpa [#allocation12], 1 }
 0x41d   :  { %718 = vsyncpa [#allocation4], 1 }
 0x41e   :  { %720 = vsyncpa [#allocation4 + $0x1], 1 }

// kernel: tpu_custom_call.1
= control target key start
LH: loop header
LB: loop body
LE: loop exit
PB: predicated region body
PF: predicated region fallthrough
CT: control target
= control target key end

     0   :  { %s1552_s0 = inlined_call_operand.hbm [shape: f32[16,128], index: 0, kind: input, shape index: {}]   ;;  %s1553_s1 = inlined_call_operand.hbm [shape: bf16[128,128], index: 1, kind: input, shape index: {}]   ;;  %s1554_s2 = inlined_call_operand.hbm [shape: f32[3,128], index: 2, kind: input, shape index: {}]   ;;  %s1555_s3 = inlined_call_operand.hbm [shape: bf16[128,128], index: 3, kind: input, shape index: {}]   ;;  %s1556_s4 = inlined_call_operand.hbm [shape: f32[3,128], index: 4, kind: input, shape index: {}]   ;;  %s1557_s5 = inlined_call_operand.hbm [shape: bf16[128,128], index: 5, kind: input, shape index: {}]   ;;  %s1558_s6 = inlined_call_operand.vmem [shape: f32[1,128], index: 6, kind: input, shape index: {}]   ;;  %s1559_s7 = inlined_call_operand.hbm [shape: f32[16,128], index: 7, kind: output, shape index: {}]  }
   0x1   :  { %1560 = sst [smem:[#allocation19_spill]] %s1553_s1 }
   0x2   :  { %12 = vsyncpa [#allocation3], 0 }
   0x3   :  { %14 = vsyncpa [#allocation3 + $0x1], 0 }
   0x4   :  { %15 = vsyncpa [#allocation6], 0 }
   0x5   :  { %16 = vsyncpa [#allocation9], 0 }
   0x6   :  { %17 = vsyncpa [#allocation12], 0 }
   0x7   :  { %18 = vsyncpa [#allocation4], 0 }
   0x8   :  { %20 = vsyncpa [#allocation4 + $0x1], 0  ;;  %s1369_s24 = smov 0   ;;  %s1371_s25 = smov 0  }
   0x9   :  { %s1373_s26 = smov 0   ;;  %s1375_s27 = smov 0  }
   0xa LB: > { %s1561_s1 = sld [smem:[#allocation19_spill]]  ;;  %s1393_s8 = sadd.s32 4294967295, %s1319_s27   ;;  %s1319_s27 = sphi %s1375_s27, %s1572_s27   ;;  %s1315_s26 = sphi %s1373_s26, %s1571_s26   ;;  %s1311_s25 = sphi %s1371_s25, %s1570_s25   ;;  %s1307_s24 = sphi %s1369_s24, %s1569_s24  }
   0xb   : > { %p813_p0 = scmp.ge.s32.totalorder %s1319_s27, 1  ;;  %p47_p1 = scmp.eq.s32.totalorder %s1393_s8, 0 }
   0xc   : > { %p209_p2 = scmp.lt.s32.totalorder %s1319_s27, 3  ;;  %s1321_s10 = smov [#allocation5]  }
   0xd   : > { %s222_s11 = sshll.u32 %s1321_s10, 4  ;;  %s246_s14 = sshll.u32 %s1555_s3, 4  ;;  %s223_s11 = int_to_ptr.vmem [resolvable:$true] %s222_s11  ;;  %s247_s14 = int_to_ptr.hbm [resolvable:$true] %s246_s14 }
   0xe   : > { %p1398_p3 = pnand %p813_p0, %p209_p2  ;;  %s235_s18 = sshll.u32 %s1554_s2, 4  ;;  %s236_s18 = int_to_ptr.hbm [resolvable:$true] %s235_s18 }
   0xf   : > { %s1322_s19 = smov [#allocation8]   ;;  %s1323_s21 = smov 64  }
  0x10   : > { %s220_s30 = sshll.u32 %s1561_s1, 4  ;;  %p978_p4 = pneg %p1398_p3  ;;  %s221_s30 = int_to_ptr.hbm [resolvable:$true] %s220_s30 }
  0x11   : > { %s248_s20 = sshll.u32 %s1322_s19, 4  ;;  %s1324_s22 = smov 4   ;;  %s249_s20 = int_to_ptr.vmem [resolvable:$true] %s248_s20 }
  0x12   : > { %p1410_p6 = pnand %p978_p4, %p47_p1  ;;  %s261_s29 = sshll.u32 %s1556_s4, 4  ;;  %s262_s29 = int_to_ptr.hbm [resolvable:$true] %s261_s29 }
  0x13   : > { %s1325_s10 = smov [#allocation7]   ;;  %s272_s16 = sshll.u32 %s1557_s5, 4  ;;  %s273_s16 = int_to_ptr.hbm [resolvable:$true] %s272_s16 }
  0x14   : > { %981 = dma.hbm_to_vmem [thread:$0]  (!%p1410_p6), %s221_s30, 1024, %s223_s11, [#allocation6], %s1323_s21, %s1323_s21, %s1324_s22  }
  0x15   : > { %987 = dma.hbm_to_vmem [thread:$0]  (!%p1410_p6), %s247_s14, 1024, %s249_s20, [#allocation9], %s1323_s21, %s1323_s21, %s1324_s22  }
  0x16   : > { %s237_s12 = sshll.u32 %s1325_s10, 4  ;;  %s1326_s30 = smov [#allocation10]   ;;  %s238_s12 = int_to_ptr.vmem [resolvable:$true] %s237_s12 }
  0x17   : > { %984 = dma.hbm_to_vmem [thread:$0]  (!%p1410_p6), %s236_s18, 64, %s238_s12, [#allocation6]  }
  0x18   : > { %s263_s11 = sshll.u32 %s1326_s30, 4  ;;  %s1327_s17 = smov [#allocation11]   ;;  %s264_s11 = int_to_ptr.vmem [resolvable:$true] %s263_s11 }
  0x19   : > { %990 = dma.hbm_to_vmem [thread:$0]  (!%p1410_p6), %s262_s29, 64, %s264_s11, [#allocation9]  }
  0x1a   : > { %s274_s19 = sshll.u32 %s1327_s17, 4  ;;  %s812_s18 = sadd.s32 4294967294, %s1319_s27   ;;  %s275_s19 = int_to_ptr.vmem [resolvable:$true] %s274_s19 }
  0x1b   : > { %993 = dma.hbm_to_vmem [thread:$0]  (!%p1410_p6), %s273_s16, 1024, %s275_s19, [#allocation12], %s1323_s21, %s1323_s21, %s1324_s22  }
  0x1c   : > { %s1435_s20 = sadd.s32 1, %s1319_s27   ;;  %s33_s23 = sadd.s32 1, %s1315_s26 }
  0x1d   : > { %s30_s28 = ssub.s32 %s1319_s27, %s1435_s20  ;;  %p40_p7 = scmp.ne.s32.totalorder %s1315_s26, %s1311_s25 }
  0x1e   : > { %p31_p8 = scmp.eq.s32.totalorder %s30_s28, 0  ;;  %p41_p9 = scmp.eq.s32.totalorder %s1319_s27, 0 }
  0x1f   : > { %p46_p10 = scmp.ne.s32.totalorder %s1311_s25, %s1307_s24  ;;  %p196_p11 = scmp.eq.s32.totalorder %s1393_s8, 1 }
  0x20   : > { %s1447_s29 = scalar_select %p31_p8, %s1315_s26, %s33_s23  }
  0x21   : > { %p1451_p12 = por %p47_p1, %p46_p10  ;;  %p1455_p13 = por %p196_p11, %p40_p7 }
  0x22   : > { %p202_p0 = scmp.eq.s32.totalorder %s812_s18, 1  ;;  %p42_p2 = por %p41_p9, %p40_p7 }
  0x23   : > { %s291_s22 = sand.u32 1, %s1315_s26   ;;  %p1007_p6 = scmp.lt.s32.totalorder %s1319_s27, 2 }
  0x24   : > { %p1460_p4 = por %p202_p0, %p46_p10  ;;  %s820_s12 = sshll.u32 %s291_s22, 3 }
  0x25   : > { %s821_s30 = sshll.u32 %s1319_s27, 3  ;;  %s295_s17 = scalar_lea.vmem [#allocation2], %s820_s12 }
  0x26   : > { %s299_s14 = scalar_lea.hbm %s1552_s0, %s821_s30  ;;  %s303_s19 = sshll.u32 %s295_s17, 4  ;;  %s304_s19 = int_to_ptr.vmem [resolvable:$true] %s303_s19 }
  0x27   : > { %s301_s16 = sshll.u32 %s299_s14, 4  ;;  %p1469_p8 = pnand %p1007_p6, %p42_p2  ;;  %s302_s16 = int_to_ptr.hbm [resolvable:$true] %s301_s16 }
  0x28   : > { %s292_s23 = scalar_lea.sflag [#allocation3], %s291_s22  ;;  %s1211_s28 = sshra.s32 %s302_s16, 4  ;;  %s1212_s28 = int_to_ptr.hbm [resolvable:$true] %s1211_s28 }
  0x29   : > { %s1213_s1 = scalar_lea.hbm %s1212_s28, 8  ;;  %p1215_p9 = pneg %p1469_p8 }
  0x2a   : > { %p1214_p7 = scmp.ne.s32.totalorder %s1212_s28, %s1213_s1  ;;  %s1218_s12 = scalar_lea.hbm %s1552_s0, 16 }
  0x2b   : > { %p1219_p0 = scmp.lt.s32.totalorder %s1212_s28, %s1552_s0  ;;  %p1220_p2 = scmp.lt.s32.totalorder %s1218_s12, %s1213_s1 }
  0x2c   : > { %p1216_p10 = pnand %p1215_p9, %p1214_p7 }
  0x2d   : > { %p1221_p6 = por %p1220_p2, %p1219_p0 }
  0x2e   : > { %p1217_p11 = pneg %p1216_p10 }
  0x30   : > { %p1222_p5 = pnand %p1221_p6, %p1217_p11 }
  0x32   : > { %1225 = shalt.err (!%p1222_p5)
}
  0x33   : > { %997 = dma.hbm_to_vmem [thread:$0]  (!%p1469_p8), %s302_s16, 128, %s304_s19, %s292_s23  }
  0x34   : > { %312 = sbr.rel (%p1398_p3) target bundleno = 1034 (0x40a), region = 48  ;;  %s1486_s22 = sand.u32 (!%p1398_p3), 1, %s1311_s25  }
  0x35   : > { %s823_s17 = sshll.u32 (!%p1398_p3), %s1486_s22, 3  ;;  %s315_s30 = scalar_lea.sflag (!%p1398_p3), [#allocation3], %s1486_s22 }
  0x36   : > { %s318_s1 = scalar_lea.vmem (!%p1398_p3), [#allocation2], %s823_s17 }
  0x39   : > { %1286 = dma.done.wait (%p1451_p12), %s315_s30, 128  }
  0x3a   : > { %1288 = vsyncadd (%p1451_p12), %s315_s30, 4294967168 }
  0x3b   : > { %1290 = dma.done.wait (%p47_p1), [#allocation6], 1088  }
  0x3c   : > { %1292 = vsyncadd (%p47_p1), [#allocation6], 4294966208 }
  0x3d   : > { %1294 = dma.done.wait (%p47_p1), [#allocation9], 1088  }
  0x3e   : > { %1296 = vsyncadd (%p47_p1), [#allocation9], 4294966208 }
  0x3f   : > { %1298 = dma.done.wait (%p47_p1), [#allocation12], 1024  }
  0x40   : > { %1300 = vsyncadd (%p47_p1), [#allocation12], 4294966272  ;;  %v937_v0 = vld [vmem:[#allocation5 + $0x38] sm:$0xff]  ;;  %v936_v1 = vld [vmem:[#allocation5 + $0x30] sm:$0xff]  ;;  %v1328_v16 = vmov 128.0   ;;  %s927_s9 = sshll.u32 %s1393_s8, 3 }
  0x41   : > { %443 = vmatpush.bf16.msra.mxu0 %v937_v0  ;;  %v935_v2 = vld [vmem:[#allocation5 + $0x28] sm:$0xff]  ;;  %v934_v3 = vld [vmem:[#allocation5 + $0x20] sm:$0xff]  ;;  %v933_v4 = vld [vmem:[#allocation5 + $0x18] sm:$0xff]  ;;  %1055 = vrcp.f32 %v1328_v16  ;;  %s689_s23 = scalar_lea.hbm %s1559_s7, %s927_s9  ;;  %s374_s28 = scalar_lea.vmem [#allocation13], %s823_s17 }
  0x42   : > { %v932_v5 = vld [vmem:[#allocation5 + $0x10] sm:$0xff]  ;;  %v931_v6 = vld [vmem:[#allocation5 + $0x8] sm:$0xff]  ;;  %v930_v7 = vld [vmem:[#allocation5] sm:$0xff]  ;;  %s691_s11 = sshll.u32 %s374_s28, 4  ;;  %s693_s12 = sshll.u32 %s689_s23, 4  ;;  %s692_s11 = int_to_ptr.vmem [resolvable:$true] %s691_s11  ;;  %s694_s12 = int_to_ptr.hbm [resolvable:$true] %s693_s12 }
  0x43   : > { %v375_v8 = vld [vmem:[%s318_s1] sm:$0xff]  ;;  %v392_v10 = vld [vmem:[#allocation7] sm:$0x7]  ;;  %v942_v30 = vld [vmem:[#allocation8 + $0x20] sm:$0xff]  ;;  %s679_s8 = scalar_lea.sflag [#allocation4], %s1486_s22  ;;  %s1255_s13 = sshra.s32 %s694_s12, 4  ;;  %s1256_s13 = int_to_ptr.hbm [resolvable:$true] %s1255_s13 }
  0x44   : > { %v393_v9 = vpack.c.bf16 %v375_v8, %v375_v8  ;;  %v394_v11 = vperm.slane %v392_v10, 0  ;;  %v945_v17 = vld [vmem:[#allocation8 + $0x38] sm:$0xff]  ;;  %v944_v28 = vld [vmem:[#allocation8 + $0x30] sm:$0xff]  ;;  %v943_v29 = vld [vmem:[#allocation8 + $0x28] sm:$0xff]  ;;  %v484_v44 = vperm.slane %v392_v10, 1  ;;  %v486_v47 = vperm.slane %v392_v10, 2  ;;  %p1262_p12 = scmp.lt.s32.totalorder %s1256_s13, %s1559_s7 }
  0x45   : > { %444 = vmatpush.bf16.msra.mxu0 %v936_v1  ;;  %555 = vmatpush.bf16.msra.mxu1 %v945_v17  ;;  %v941_v31 = vld [vmem:[#allocation8 + $0x18] sm:$0xff]  ;;  %v940_v32 = vld [vmem:[#allocation8 + $0x10] sm:$0xff]  ;;  %v939_v33 = vld [vmem:[#allocation8 + $0x8] sm:$0xff]  ;;  %s1257_s14 = scalar_lea.hbm %s1256_s13, 8  ;;  %s1261_s9 = scalar_lea.hbm %s1559_s7, 16 }
  0x46   : > { %v938_v34 = vld [vmem:[#allocation8] sm:$0xff]  ;;  %v952_v63 = vld [vmem:[#allocation11 + $0x30] sm:$0xff]  ;;  %v951_v0 = vld [vmem:[#allocation11 + $0x28] sm:$0xff]  ;;  %p1258_p1 = scmp.ne.s32.totalorder %s1256_s13, %s1257_s14  ;;  %p1263_p8 = scmp.lt.s32.totalorder %s1261_s9, %s1257_s14 }
  0x47   : > { %v1056_v18 = vpop.eup %1055  ;;  %v504_v51 = vld [vmem:[#allocation10] sm:$0x7]  ;;  %v950_v1 = vld [vmem:[#allocation11 + $0x20] sm:$0xff] }
  0x48   : > { %v460_v19 = vmul.f32 128.0, %v1056_v18  ;;  %vm464_vm0 = vweird.f32 %v1056_v18  ;;  %v506_v52 = vperm.slane %v504_v51, 0  ;;  %v953_v58 = vld [vmem:[#allocation11 + $0x38] sm:$0xff]  ;;  %p1259_p3 = pnand %p1258_p1, %p1455_p13  ;;  %p1264_p7 = por %p1263_p8, %p1262_p12 }
  0x49   : > { %445 = vmatpush.bf16.msra.mxu0 %v935_v2  ;;  %556 = vmatpush.bf16.msra.mxu1 %v944_v28  ;;  %v949_v2 = vld [vmem:[#allocation11 + $0x18] sm:$0xff] }
  0x4a   : > { %v461_v20 = vsub.f32 1.0, %v460_v19  ;;  %663 = vmatpush.bf16.msra.mxu2 %v953_v58  ;;  %p1260_p5 = pneg %p1259_p3 }
  0x4c   : > { %v462_v21 = vmul.f32 %v1056_v18, %v461_v20  ;;  %p1265_p9 = pnand %p1264_p7, %p1260_p5 }
  0x4d   : > { %446 = vmatpush.bf16.msra.mxu0 %v934_v3  ;;  %557 = vmatpush.bf16.msra.mxu1 %v943_v29  ;;  %v948_v3 = vld [vmem:[#allocation11 + $0x10] sm:$0xff] }
  0x4e   : > { %v463_v22 = vadd.f32 %v1056_v18, %v462_v21  ;;  %664 = vmatpush.bf16.msra.mxu2 %v952_v63 }
  0x50   : > { %v1508_v23 = vsel %vm464_vm0, %v1056_v18, %v463_v22  ;;  %v592_v18 = vperm.slane %v504_v51, 2  ;;  %v1054_v22 = vld [vmem:[%s1558_s6] ss:$0 sm:$0xff] }
  0x51   : > { %447 = vmatpush.bf16.msra.mxu0 %v933_v4  ;;  %558 = vmatpush.bf16.msra.mxu1 %v942_v30  ;;  %v947_v4 = vld [vmem:[#allocation11 + $0x8] sm:$0xff] }
  0x52   : > { %665 = vmatpush.bf16.msra.mxu2 %v951_v0 }
  0x55   : > { %448 = vmatpush.bf16.msra.mxu0 %v932_v5  ;;  %559 = vmatpush.bf16.msra.mxu1 %v941_v31  ;;  %v946_v5 = vld [vmem:[#allocation11] sm:$0xff] }
  0x56   : > { %666 = vmatpush.bf16.msra.mxu2 %v950_v1 }
  0x59   : > { %449 = vmatpush.bf16.msra.mxu0 %v931_v6  ;;  %560 = vmatpush.bf16.msra.mxu1 %v940_v32 }
  0x5a   : > { %667 = vmatpush.bf16.msra.mxu2 %v949_v2 }
  0x5d   : > { %450 = vmatpush.bf16.msra.mxu0 %v930_v7  ;;  %561 = vmatpush.bf16.msra.mxu1 %v939_v33 }
  0x5e   : > { %668 = vmatpush.bf16.msra.mxu2 %v948_v3 }
  0x60   : > { %451 = vmatmul.bf16.vlgmr.msra.gmra.mxu0 %v393_v9 }
  0x61   : > { %562 = vmatpush.bf16.msra.mxu1 %v938_v34 }
  0x62   : > { %669 = vmatpush.bf16.msra.mxu2 %v947_v4 }
  0x66   : > { %670 = vmatpush.bf16.msra.mxu2 %v946_v5 }
  0xdd   : > { %v452_v12 = vpop.f32.mrf.mxu0 }
  0xde   : > { %v453_v13 = vadd.f32 %v452_v12, %v394_v11 }
  0xe0   : > { %v456_v14 = vmax.f32 %v453_v13, 0.0 }
  0xe2   : > { %457 = vadd.xlane.f32.xlu0 %v456_v14 }
  0xe5   : > { %v454_v15 = vpop.f32.mrf.mxu0 }
  0xe6   : > { %v590_v15 = vperm.slane %v504_v51, 1 }
 0x155   : > { %v458_v24 = vpop.xlane.xlu0 %457 }
 0x156   : > { %v466_v25 = vmul.f32 %v1508_v23, %v458_v24 }
 0x158   : > { %v467_v26 = vsub.f32 %v456_v14, %v466_v25 }
 0x15a   : > { %v468_v27 = vmul.f32 %v467_v26, %v467_v26 }
 0x15c   : > { %469 = vadd.xlane.f32.xlu0 %v468_v27 }
 0x1cf   : > { %v470_v35 = vpop.xlane.xlu0 %469 }
 0x1d0   : > { %v471_v36 = vmul.f32 %v470_v35, %v1508_v23 }
 0x1d2   : > { %v472_v37 = vadd.f32 1e-05, %v471_v36 }
 0x1d4   : > { %1057 = vrsqrt.f32 %v472_v37  ;;  %vm479_vm2 = vweird.f32 %v472_v37 }
 0x1da   : > { %v1058_v38 = vpop.eup %1057 }
 0x1db   : > { %v474_v39 = vmul.f32 %v1058_v38, %v472_v37  ;;  %vm480_vm1 = vweird.f32 %v1058_v38 }
 0x1dc   : > { %vm481_vm3 = vmor %vm479_vm2, %vm480_vm1 }
 0x1dd   : > { %v475_v40 = vmul.f32 %v1058_v38, %v474_v39 }
 0x1df   : > { %v476_v41 = vmul.f32 0.5, %v475_v40 }
 0x1e1   : > { %v477_v42 = vsub.f32 1.5, %v476_v41 }
 0x1e3   : > { %v478_v43 = vmul.f32 %v1058_v38, %v477_v42 }
 0x1e5   : > { %v482_v45 = vsel %vm481_vm3, %v1058_v38, %v478_v43 }
 0x1e6   : > { %v483_v46 = vmul.f32 %v482_v45, %v467_v26 }
 0x1e8   : > { %v485_v48 = vmul.f32 %v484_v44, %v483_v46 }
 0x1ea   : > { %v487_v49 = vadd.f32 %v486_v47, %v485_v48 }
 0x1ec   : > { %v505_v50 = vpack.c.bf16 %v487_v49, %v487_v49 }
 0x1ee   : > { %563 = vmatmul.bf16.vlgmr.msra.gmra.mxu1 %v505_v50 }
 0x26b   : > { %v564_v53 = vpop.f32.mrf.mxu1 }
 0x26c   : > { %v565_v54 = vadd.f32 %v564_v53, %v506_v52 }
 0x26e   : > { %v568_v55 = vmax.f32 %v565_v54, 0.0 }
 0x270   : > { %v569_v56 = vadd.f32 %v568_v55, %v487_v49 }
 0x272   : > { %570 = vadd.xlane.f32.xlu1 %v569_v56 }
 0x273   : > { %v566_v57 = vpop.f32.mrf.mxu1 }
 0x2e5   : > { %v571_v59 = vpop.xlane.xlu1 %570 }
 0x2e6   : > { %v572_v60 = vmul.f32 %v571_v59, %v1508_v23 }
 0x2e8   : > { %v573_v61 = vsub.f32 %v569_v56, %v572_v60 }
 0x2ea   : > { %v574_v62 = vmul.f32 %v573_v61, %v573_v61 }
 0x2ec   : > { %575 = vadd.xlane.f32.xlu1 %v574_v62 }
 0x35f   : > { %v576_v6 = vpop.xlane.xlu1 %575 }
 0x360   : > { %v577_v7 = vmul.f32 %v576_v6, %v1508_v23 }
 0x362   : > { %v578_v8 = vadd.f32 1e-05, %v577_v7 }
 0x364   : > { %1059 = vrsqrt.f32 %v578_v8  ;;  %vm585_vm5 = vweird.f32 %v578_v8 }
 0x36a   : > { %v1060_v9 = vpop.eup %1059 }
 0x36b   : > { %v580_v10 = vmul.f32 %v1060_v9, %v578_v8  ;;  %vm586_vm4 = vweird.f32 %v1060_v9 }
 0x36c   : > { %vm587_vm6 = vmor %vm585_vm5, %vm586_vm4 }
 0x36d   : > { %v581_v11 = vmul.f32 %v1060_v9, %v580_v10 }
 0x36f   : > { %v582_v12 = vmul.f32 0.5, %v581_v11 }
 0x371   : > { %v583_v13 = vsub.f32 1.5, %v582_v12 }
 0x373   : > { %v584_v14 = vmul.f32 %v1060_v9, %v583_v13 }
 0x375   : > { %v588_v16 = vsel %vm587_vm6, %v1060_v9, %v584_v14 }
 0x376   : > { %v589_v17 = vmul.f32 %v588_v16, %v573_v61 }
 0x378   : > { %v591_v19 = vmul.f32 %v590_v15, %v589_v17 }
 0x37a   : > { %v593_v20 = vadd.f32 %v592_v18, %v591_v19 }
 0x37c   : > { %v611_v21 = vpack.c.bf16 %v593_v20, %v593_v20 }
 0x37e   : > { %671 = vmatmul.bf16.vlgmr.msra.gmra.mxu2 %v611_v21 }
 0x401   : > { %v672_v23 = vpop.f32.mrf.mxu2 }
 0x402   : > { %v673_v24 = vadd.f32 %v1054_v22, %v672_v23 }
 0x404   : > { %v676_v25 = vmax.f32 %v673_v24, 0.0 }
 0x406   : > { %677 = vst [vmem:[%s374_s28] sm:$0xff] %v676_v25 }
 0x407   : > { %1268 = shalt.err (!%p1265_p9)
}
 0x408   : > { %976 = dma.vmem_to_hbm [thread:$0]  (%p1455_p13), %s692_s11, 128, %s694_s12, %s679_s8  }
 0x409   : > { %v674_v26 = vpop.f32.mrf.mxu2 }
 0x40a PF: > { %s705_s22 = sand.u32 1, %s1307_s24   ;;  %p1568_p10 = scmp.ge.s32.totalorder %s1319_s27, 2 }
 0x40b   : > { %s706_s16 = scalar_lea.sflag [#allocation4], %s705_s22 }
 0x40c   : > { %p999_p11 = pnand %p1568_p10, %p1460_p4 }
 0x40e   : > { %p1000_p0 = pneg %p999_p11 }
 0x410   : > { %1302 = dma.done.wait (%p1000_p0), %s706_s16, 128  }
 0x411   : > { %1304 = vsyncadd (%p1000_p0), %s706_s16, 4294967168  ;;  %p23_p2 = scmp.ge.s32.totalorder %s1435_s20, 4   ;;  %s1569_s24 = smov %s1311_s25 }
 0x412   : > { %s1570_s25 = smov %s1315_s26  ;;  %s1571_s26 = smov %s1447_s29 }
 0x413   : > { %s1572_s27 = smov %s1435_s20  ;;  %25 = sbr.rel (!%p23_p2) target bundleno = 10 (0xa), region = 113 }
 0x418   :  { %712 = vsyncpa [#allocation3], 1 }
 0x419   :  { %714 = vsyncpa [#allocation3 + $0x1], 1 }
 0x41a   :  { %715 = vsyncpa [#allocation6], 1 }
 0x41b   :  { %716 = vsyncpa [#allocation9], 1 }
 0x41c   :  { %717 = vsyncpa [#allocation12], 1 }
 0x41d   :  { %718 = vsyncpa [#allocation4], 1 }
 0x41e   :  { %720 = vsyncpa [#allocation4 + $0x1], 1 }

</bundles_post_ra>
